<compile_context>
chip_gen: v7x
topology: tpu7x:2x2x1
jax: 0.10.0
libtpu: 0.0.40
codegen_flags: <defaults>
</compile_context>

<pallas_src>
import functools

import jax
import jax.numpy as jnp
from jax.experimental import pallas as pl
from jax.experimental.pallas import tpu as pltpu


def _roll_lanes(x, shift, length):
    """jnp.roll(x, shift, axis=-1) on the lane axis via the TPU XLU rotate."""
    shift = shift % length
    if shift == 0:
        return x
    return pltpu.roll(x, shift, axis=1)


def _poolconv_kernel(x_ref, bot_ref, top_ref, rgt_ref, *, H, W):
    # x_ref / *_ref: (B, L) blocks, L = H*W flattened onto the lane axis.
    B, L = x_ref.shape
    x = x_ref[...]

    p = jax.lax.broadcasted_iota(jnp.int32, (B, L), 1)  # flat index p = i*W + j
    col = p % W                                         # j
    col_ok = col != 0                                   # j >= 1

    # bottom[i,j] = x[i-1, j-1]  -> flat shift right by W+1; zero i==0 or j==0.
    bot = _roll_lanes(x, W + 1, L)
    bot_ref[...] = jnp.where(col_ok & (p >= W), bot, 0)

    # top[i,j] = x[i+1, j-1]     -> flat shift left by W-1; zero i==H-1 or j==0.
    top = _roll_lanes(x, L - (W - 1), L)
    top_ref[...] = jnp.where(col_ok & (p < (H - 1) * W), top, 0)

    # right[i,j] = x[i, j-2]     -> flat shift right by 2; zero j < 2.
    rgt = _roll_lanes(x, 2, L)
    rgt_ref[...] = jnp.where(col >= 2, rgt, 0)


def _choose_blocking(nc, l, itemsize, *, per_block_bytes=1 << 20, min_steps=4):
    """Rows-per-block and grid size from (sublane,128)-tile-rounded footprints."""
    sublane = max(8, 32 // itemsize)             # 8 / 16 / 32 for f32 / bf16 / int8
    lane_l = pl.cdiv(l, 128) * 128               # lane-tile rounded row length
    group_bytes = sublane * lane_l * itemsize    # one sublane group of one buffer
    # Largest block whose tile-rounded footprint fits the per-buffer budget
    # (the pipeline double-buffers 1 input + 3 output blocks).
    max_rows = max(sublane, (per_block_bytes // group_bytes) * sublane)
    max_rows = min(max_rows, nc)
    # Don't force tiny sub-sublane blocks just to manufacture grid steps.
    min_steps = min(min_steps, max(1, nc // sublane))
    steps = max(pl.cdiv(nc, max_rows), min_steps)
    if steps > 1 and steps % 2:
        steps += 1                               # even split across v7x's 2 TCs
    steps = min(steps, nc)
    block_rows = pl.cdiv(nc, steps)              # balanced blocks, <= max_rows
    if block_rows < nc:
        block_rows = min(nc, pl.cdiv(block_rows, sublane) * sublane)
    grid = pl.cdiv(nc, block_rows)               # ragged last block is fine
    return block_rows, grid


def pool_conv(x):
    """PoolConv forward: returns (bottom, top, right), each shaped like x."""
    N, C, H, W = x.shape
    NC, L = N * C, H * W
    itemsize = jnp.dtype(x.dtype).itemsize

    # Free, contiguous reshape: channels on sublanes, flattened H*W on lanes.
    xr = x.reshape(NC, L)

    block_rows, grid = _choose_blocking(NC, L, itemsize)

    out_sds = jax.ShapeDtypeStruct((NC, L), x.dtype)
    spec = pl.BlockSpec((block_rows, L), lambda i: (i, 0))
    kernel = functools.partial(_poolconv_kernel, H=H, W=W)

    bot, top, rgt = pl.pallas_call(
        kernel,
        out_shape=(out_sds, out_sds, out_sds),
        grid_spec=pltpu.PrefetchScalarGridSpec(
            num_scalar_prefetch=0,
            grid=(grid,),
            in_specs=[spec],
            out_specs=[spec, spec, spec],
        ),
        compiler_params=pltpu.CompilerParams(
            dimension_semantics=("parallel",),     # megacore / 2-TC sharding
            vmem_limit_bytes=40 * 1024 * 1024,     # safe on v5e/v6e and v7x (64 MiB)
        ),
    )(xr)

    unflat = lambda t: t.reshape(N, C, H, W)
    return unflat(bot), unflat(top), unflat(rgt)


def make_poolconv_weights(channels, dtype=jnp.float32):
    # Exactly the buffers built in PoolConv.__init__ (OIHW, one per channel, groups=C).
    wb = jnp.zeros((3, 3), dtype).at[0, 0].set(1.0)   # bottom_weight
    wt = jnp.zeros((3, 3), dtype).at[2, 0].set(1.0)   # top_weight
    wr = jnp.zeros((5, 5), dtype).at[2, 0].set(1.0)   # right_weight
    rep = lambda w: jnp.tile(w[None, None], (channels, 1, 1, 1))  # (C,1,k,k)
    return rep(wb), rep(wt), rep(wr)


def _reference_poolconv(x, wb, wt, wr):
    # Pure-XLA reference: the actual grouped convolutions, PyTorch semantics.
    C = x.shape[1]

    def dw(inp, w, pad):
        return jax.lax.conv_general_dilated(
            inp, w, window_strides=(1, 1), padding=[(pad, pad), (pad, pad)],
            dimension_numbers=("NCHW", "OIHW", "NCHW"), feature_group_count=C)

    return dw(x, wb, 1), dw(x, wt, 1), dw(x, wr, 2)


if __name__ == "__main__":
    key = jax.random.PRNGKey(0)
    N, C, H, W = 2, 4, 16, 16
    x = jax.random.normal(key, (N, C, H, W), dtype=jnp.float32)

    bottom, top, right = jax.block_until_ready(jax.jit(pool_conv)(x))

    wb, wt, wr = make_poolconv_weights(C, x.dtype)
    ref_b, ref_t, ref_r = _reference_poolconv(x, wb, wt, wr)

    assert bottom.shape == (N, C, H, W)
    assert top.shape == (N, C, H, W)
    assert right.shape == (N, C, H, W)
    assert jnp.allclose(bottom, ref_b), "bottom mismatch"
    assert jnp.allclose(top, ref_t), "top mismatch"
    assert jnp.allclose(right, ref_r), "right mismatch"
    print("KERNEL_OK")
</pallas_src>

<mosaic_0001>
module attributes {stable_mosaic.version = 11 : i64} {
  func.func @_poolconv_kernel(%arg0: i32, %arg1: memref<8x256xf32, #tpu.memory_space<vmem>>, %arg2: memref<8x256xf32, #tpu.memory_space<vmem>>, %arg3: memref<8x256xf32, #tpu.memory_space<vmem>>, %arg4: memref<8x256xf32, #tpu.memory_space<vmem>>) attributes {dimension_semantics = [#tpu.dimension_semantics<parallel>], iteration_bounds = array<i64: 1>, scalar_prefetch = 0 : i64, scratch_operands = 0 : i64, tpu.core_type = #tpu.core_type<tc>, window_params = [{transform_indices = @transform_0, window_bounds = array<i64: 8, 256>}, {transform_indices = @transform_1, window_bounds = array<i64: 8, 256>}, {transform_indices = @transform_2, window_bounds = array<i64: 8, 256>}, {transform_indices = @transform_3, window_bounds = array<i64: 8, 256>}]} {
    %c0 = arith.constant 0 : index
    %c0_0 = arith.constant 0 : index
    %0 = vector.load %arg1[%c0, %c0_0] : memref<8x256xf32, #tpu.memory_space<vmem>>, vector<8x256xf32>
    %1 = tpu.iota {dimensions = array<i32: 1>} : vector<8x256xi32>
    %c16_i32 = arith.constant 16 : i32
    %c0_i32 = arith.constant 0 : i32
    %2 = arith.cmpi eq, %c16_i32, %c0_i32 : i32
    %c1_i32 = arith.constant 1 : i32
    %3 = arith.select %2, %c1_i32, %c16_i32 : i32
    %4 = vector.broadcast %3 : i32 to vector<8x256xi32>
    %5 = arith.remsi %1, %4 : vector<8x256xi32>
    %c0_i32_1 = arith.constant 0 : i32
    %6 = vector.broadcast %c0_i32_1 : i32 to vector<8x256xi32>
    %7 = arith.cmpi ne, %5, %6 : vector<8x256xi32>
    %c0_i32_2 = arith.constant 0 : i32
    %8 = vector.broadcast %c0_i32_2 : i32 to vector<8x256xi32>
    %9 = arith.cmpi slt, %5, %8 : vector<8x256xi32>
    %c0_i32_3 = arith.constant 0 : i32
    %10 = arith.cmpi slt, %3, %c0_i32_3 : i32
    %11 = vector.broadcast %10 : i1 to vector<8x256xi1>
    %12 = vector.broadcast %11 : vector<8x256xi1> to vector<8x256xi1>
    %13 = arith.xori %9, %12 : vector<8x256xi1>
    %14 = arith.andi %13, %7 : vector<8x256xi1>
    %15 = vector.broadcast %3 : i32 to vector<8x256xi32>
    %16 = arith.addi %5, %15 : vector<8x256xi32>
    %17 = arith.select %14, %16, %5 : vector<8x256xi1>, vector<8x256xi32>
    %c0_i32_4 = arith.constant 0 : i32
    %18 = vector.broadcast %c0_i32_4 : i32 to vector<8x256xi32>
    %19 = arith.cmpi ne, %17, %18 : vector<8x256xi32>
    %c17_i32 = arith.constant 17 : i32
    %20 = tpu.dynamic_rotate %0 by %c17_i32 dim 1 : vector<8x256xf32>, i32 -> vector<8x256xf32>
    %c16_i32_5 = arith.constant 16 : i32
    %21 = vector.broadcast %c16_i32_5 : i32 to vector<8x256xi32>
    %22 = arith.cmpi sge, %1, %21 : vector<8x256xi32>
    %23 = arith.andi %19, %22 : vector<8x256xi1>
    %c0_i32_6 = arith.constant 0 : i32
    %24 = arith.sitofp %c0_i32_6 : i32 to f32
    %25 = vector.broadcast %24 : f32 to vector<8x256xf32>
    %26 = arith.select %23, %20, %25 : vector<8x256xi1>, vector<8x256xf32>
    %c0_7 = arith.constant 0 : index
    %c0_8 = arith.constant 0 : index
    %27 = vector.load %arg2[%c0_7, %c0_8] : memref<8x256xf32, #tpu.memory_space<vmem>>, vector<8x256xf32>
    tpu.vector_store %arg2[%c0_7, %c0_8], %26 {strides = array<i32>} : memref<8x256xf32, #tpu.memory_space<vmem>>, vector<8x256xf32>,
    %c241_i32 = arith.constant 241 : i32
    %28 = tpu.dynamic_rotate %0 by %c241_i32 dim 1 : vector<8x256xf32>, i32 -> vector<8x256xf32>
    %c240_i32 = arith.constant 240 : i32
    %29 = vector.broadcast %c240_i32 : i32 to vector<8x256xi32>
    %30 = arith.cmpi slt, %1, %29 : vector<8x256xi32>
    %31 = arith.andi %19, %30 : vector<8x256xi1>
    %c0_i32_9 = arith.constant 0 : i32
    %32 = arith.sitofp %c0_i32_9 : i32 to f32
    %33 = vector.broadcast %32 : f32 to vector<8x256xf32>
    %34 = arith.select %31, %28, %33 : vector<8x256xi1>, vector<8x256xf32>
    %c0_10 = arith.constant 0 : index
    %c0_11 = arith.constant 0 : index
    %35 = vector.load %arg3[%c0_10, %c0_11] : memref<8x256xf32, #tpu.memory_space<vmem>>, vector<8x256xf32>
    tpu.vector_store %arg3[%c0_10, %c0_11], %34 {strides = array<i32>} : memref<8x256xf32, #tpu.memory_space<vmem>>, vector<8x256xf32>,
    %c2_i32 = arith.constant 2 : i32
    %36 = tpu.dynamic_rotate %0 by %c2_i32 dim 1 : vector<8x256xf32>, i32 -> vector<8x256xf32>
    %c2_i32_12 = arith.constant 2 : i32
    %37 = vector.broadcast %c2_i32_12 : i32 to vector<8x256xi32>
    %38 = arith.cmpi sge, %17, %37 : vector<8x256xi32>
    %c0_i32_13 = arith.constant 0 : i32
    %39 = arith.sitofp %c0_i32_13 : i32 to f32
    %40 = vector.broadcast %39 : f32 to vector<8x256xf32>
    %41 = arith.select %38, %36, %40 : vector<8x256xi1>, vector<8x256xf32>
    %c0_14 = arith.constant 0 : index
    %c0_15 = arith.constant 0 : index
    %42 = vector.load %arg4[%c0_14, %c0_15] : memref<8x256xf32, #tpu.memory_space<vmem>>, vector<8x256xf32>
    tpu.vector_store %arg4[%c0_14, %c0_15], %41 {strides = array<i32>} : memref<8x256xf32, #tpu.memory_space<vmem>>, vector<8x256xf32>,
    return
  }
  func.func @transform_0(%arg0: i32) -> (i32, i32) {
    %c0_i32 = arith.constant 0 : i32
    %c0_i32_0 = arith.constant 0 : i32
    return %arg0, %c0_i32 : i32, i32
  }
  func.func @transform_1(%arg0: i32) -> (i32, i32) {
    %c0_i32 = arith.constant 0 : i32
    %c0_i32_0 = arith.constant 0 : i32
    return %arg0, %c0_i32 : i32, i32
  }
  func.func @transform_2(%arg0: i32) -> (i32, i32) {
    %c0_i32 = arith.constant 0 : i32
    %c0_i32_0 = arith.constant 0 : i32
    return %arg0, %c0_i32 : i32, i32
  }
  func.func @transform_3(%arg0: i32) -> (i32, i32) {
    %c0_i32 = arith.constant 0 : i32
    %c0_i32_0 = arith.constant 0 : i32
    return %arg0, %c0_i32 : i32, i32
  }
}

</mosaic_0001>

<bundles_post_ra>
// kernel: pool_conv.1
= control target key start
LH: loop header
LB: loop body
LE: loop exit
PB: predicated region body
PF: predicated region fallthrough
CT: control target
= control target key end

     0   :  { %s100_s14 = smov 113   ;;  %s101_s15 = smov 17   ;;  %v13_v2 = vlaneseq  ;;  %s171_s0 = inlined_call_operand.vmem [shape: f32[8,256], index: 0, kind: input, shape index: {}]   ;;  %s172_s2 = inlined_call_operand.vmem [shape: f32[8,256], index: 2, kind: output, shape index: {1}]   ;;  %s173_s1 = inlined_call_operand.vmem [shape: f32[8,256], index: 1, kind: output, shape index: {0}]   ;;  %s174_s3 = inlined_call_operand.vmem [shape: f32[8,256], index: 3, kind: output, shape index: {2}]  }
   0x1   :  { %v11_v0 = vld [vmem:[%s171_s0] sm:$0xff]  ;;  %v12_v1 = vld [vmem:[%s171_s0 + $0x8] sm:$0xff]  ;;  %s102_s18 = smov 2  }
   0x2   :  { %57 = vrot.lane.b32.xlu1 %v11_v0, %s100_s14  ;;  %42 = vrot.lane.b32.xlu0 %v11_v0, %s101_s15  ;;  %v14_v3 = vand.u32 127, %v13_v2 }
   0x4   :  { %v15_v4 = vadd.s32 128, %v14_v3  ;;  %v20_v5 = vand.u32 15, %v14_v3  ;;  %vm49_vm1 = vcmp.ge.s32.totalorder %v14_v3, 16  ;;  %vm61_vm4 = vcmp.lt.s32.totalorder %v14_v3, 113 }
   0x5   :  { %vm46_vm5 = vcmp.lt.s32.totalorder %v14_v3, 17  ;;  %vm76_vm8 = vcmp.lt.s32.totalorder %v14_v3, 2 }
   0x6   :  { %59 = vrot.lane.b32.xlu1 %v12_v1, %s100_s14  ;;  %44 = vrot.lane.b32.xlu0 %v12_v1, %s101_s15  ;;  %v27_v6 = vand.u32 15, %v15_v4  ;;  %vm129_vm0 = vcmp.ne.s32.totalorder %v20_v5, 0  ;;  %vm65_vm3 = vcmp.lt.s32.totalorder %v15_v4, 240  ;;  %vm79_vm9 = vcmp.ge.s32.totalorder %v20_v5, 2 }
   0x7   :  { %vm139_vm6 = vmand %vm129_vm0, %vm49_vm1 }
   0x8   :  { %vm133_vm2 = vcmp.ne.s32.totalorder %v27_v6, 0  ;;  %vm80_vm10 = vcmp.ge.s32.totalorder %v27_v6, 2 }
   0x9   :  { %vm67_vm7 = vmand %vm133_vm2, %vm65_vm3 }
   0xa   :  { %74 = vrot.lane.b32.xlu1 %v12_v1, %s102_s18  ;;  %72 = vrot.lane.b32.xlu0 %v11_v0, %s102_s18 }
  0x74   :  { %v58_v8 = vpop.permute.xlu1 %57  ;;  %v43_v9 = vpop.permute.xlu0 %42 }
  0x78   :  { %v60_v12 = vpop.permute.xlu1 %59  ;;  %v45_v13 = vpop.permute.xlu0 %44 }
  0x79   :  { %v62_v14 = vsel %vm61_vm4, %v58_v8, %v60_v12  ;;  %v63_v15 = vsel %vm61_vm4, %v60_v12, %v58_v8  ;;  %v47_v16 = vsel %vm46_vm5, %v43_v9, %v45_v13  ;;  %v48_v17 = vsel %vm46_vm5, %v45_v13, %v43_v9 }
  0x7a   :  { %v68_v18 = vsel %vm129_vm0, %v62_v14, 0.0  ;;  %v69_v19 = vsel %vm67_vm7, %v63_v15, 0.0  ;;  %v53_v20 = vsel %vm139_vm6, %v48_v17, 0.0  ;;  %v54_v21 = vsel %vm133_vm2, %v47_v16, 0.0 }
  0x7b   :  { %70 = vst [vmem:[%s172_s2] sm:$0xff] %v68_v18  ;;  %71 = vst [vmem:[%s172_s2 + $0x8] sm:$0xff] %v69_v19 }
  0x7c   :  { %55 = vst [vmem:[%s173_s1] sm:$0xff] %v53_v20  ;;  %56 = vst [vmem:[%s173_s1 + $0x8] sm:$0xff] %v54_v21  ;;  %v75_v22 = vpop.permute.xlu1 %74  ;;  %v73_v23 = vpop.permute.xlu0 %72 }
  0x7d   :  { %v77_v24 = vsel %vm76_vm8, %v73_v23, %v75_v22  ;;  %v78_v25 = vsel %vm76_vm8, %v75_v22, %v73_v23 }
  0x7e   :  { %v81_v26 = vsel %vm79_vm9, %v78_v25, 0.0  ;;  %v82_v27 = vsel %vm80_vm10, %v77_v24, 0.0 }
  0x7f   :  { %83 = vst [vmem:[%s174_s3] sm:$0xff] %v81_v26  ;;  %84 = vst [vmem:[%s174_s3 + $0x8] sm:$0xff] %v82_v27 }

</bundles_post_ra>
